<compile_context>
chip_gen: v7x
topology: tpu7x:2x2x1
jax: 0.10.0
libtpu: 0.0.40
codegen_flags: <defaults>
</compile_context>

<pallas_src>
import functools

import jax
import jax.numpy as jnp
import numpy as np
from jax.experimental import pallas as pl
from jax.experimental.pallas import tpu as pltpu


# ----------------------------------------------------------------------------
# Fused Pallas kernel: whole TCN stack + linear head for one batch tile
# ----------------------------------------------------------------------------
def tcn_fused_kernel(x_ref, *refs, layers, ksize, L):
    """Whole TCN for one batch tile.

    x_ref : (Bt*L, Cin)  flattened (batch, time) rows, channels on lanes.
    refs  : per layer [w1f (k*Cin,Cout), b1 (1,Cout), w2f (k*Cout,Cout),
            b2 (1,Cout), (+ wd (Cin,Cout), bd (1,Cout) iff downsample)] ...,
            then lin_w_t (C_last, out), lin_b (1, out), o_ref (Bt, out).
    layers: tuple of (dilation, use_downsample) per TemporalBlock.
    """
    o_ref = refs[-1]
    lin_w_ref = refs[-3]
    lin_b_ref = refs[-2]
    wrefs = refs[:-3]

    y = x_ref[...].astype(jnp.float32)                 # (Bt*L, Cin)
    BL = y.shape[0]

    def causal_conv(inp, w_flat, bias, dilation):
        cin = inp.shape[1]
        # batch-local time index of every flattened row
        row_t = jax.lax.broadcasted_iota(jnp.int32, (BL, cin), 0) % L
        cols = []
        for j in range(ksize):
            s = (ksize - 1 - j) * dilation             # causal left shift, tap j
            if s == 0:
                cols.append(inp)
            elif s >= L:
                cols.append(jnp.zeros_like(inp))
            else:
                # rolled[i] = inp[i - s]; mask rows whose time index < s
                rolled = pltpu.roll(inp, shift=s, axis=0)
                cols.append(jnp.where(row_t >= s, rolled, 0.0))
        patches = jnp.concatenate(cols, axis=1)        # (BL, k*cin) im2col
        return jnp.dot(patches, w_flat,
                       preferred_element_type=jnp.float32) + bias

    idx = 0
    for dilation, use_ds in layers:
        w1 = wrefs[idx][...]
        b1 = wrefs[idx + 1][...]
        w2 = wrefs[idx + 2][...]
        b2 = wrefs[idx + 3][...]
        idx += 4
        # conv1 -> chomp -> relu -> (dropout: identity)
        h = jnp.maximum(causal_conv(y, w1, b1, dilation), 0.0)
        # conv2 -> chomp -> relu -> (dropout: identity)
        h = jnp.maximum(causal_conv(h, w2, b2, dilation), 0.0)
        if use_ds:
            wd = wrefs[idx][...]
            bd = wrefs[idx + 1][...]
            idx += 2
            res = jnp.dot(y, wd, preferred_element_type=jnp.float32) + bd
        else:
            res = y
        y = jnp.maximum(h + res, 0.0)

    # Linear head on the last timestep of every batch element.
    # Select rows where t == L-1 with a tiny one-hot matmul (no reshape /
    # relayout of the (BL, C) activation needed).
    Bt = BL // L
    b_idx = jax.lax.broadcasted_iota(jnp.int32, (Bt, BL), 0)
    i_idx = jax.lax.broadcasted_iota(jnp.int32, (Bt, BL), 1)
    sel = (i_idx == b_idx * L + (L - 1)).astype(jnp.float32)   # (Bt, BL)
    y_last = jnp.dot(sel, y, preferred_element_type=jnp.float32)  # (Bt, C)
    o_ref[...] = (jnp.dot(y_last, lin_w_ref[...],
                          preferred_element_type=jnp.float32)
                  + lin_b_ref[...])


# ----------------------------------------------------------------------------
# Wrapper
# ----------------------------------------------------------------------------
def tcn_forward(x_ncl, params, *, ksize):
    """Matches TCN.forward: x is (B, Cin, L) NCW like PyTorch."""
    B, Cin, L = x_ncl.shape
    x = jnp.transpose(x_ncl, (0, 2, 1)).astype(jnp.float32)    # (B, L, Cin)

    # Several batch elements per grid step (amortize ~0.35us per-step
    # overhead); pad batch so the grid divides evenly.
    Bt = B if B <= 8 else 8
    Bp = ((B + Bt - 1) // Bt) * Bt
    if Bp != B:
        x = jnp.pad(x, ((0, Bp - B), (0, 0), (0, 0)))
    x_flat = x.reshape(Bp * L, Cin)

    args = [x_flat]
    in_specs = [pl.BlockSpec((Bt * L, Cin), lambda b: (b, 0))]
    layers = []
    for i, blk in enumerate(params["blocks"]):
        k, cin, cout = blk["w1"].shape
        w1f = blk["w1"].reshape(k * cin, cout)    # fused im2col weights
        w2f = blk["w2"].reshape(k * cout, cout)
        args += [w1f, blk["b1"], w2f, blk["b2"]]
        in_specs += [pl.BlockSpec(w1f.shape, lambda b: (0, 0)),
                     pl.BlockSpec(blk["b1"].shape, lambda b: (0, 0)),
                     pl.BlockSpec(w2f.shape, lambda b: (0, 0)),
                     pl.BlockSpec(blk["b2"].shape, lambda b: (0, 0))]
        if blk["use_downsample"]:
            args += [blk["wd"], blk["bd"]]
            in_specs += [pl.BlockSpec(blk["wd"].shape, lambda b: (0, 0)),
                         pl.BlockSpec(blk["bd"].shape, lambda b: (0, 0))]
        layers.append((2 ** i, bool(blk["use_downsample"])))

    lin_w_t, lin_b = params["lin_w_t"], params["lin_b"]
    out_dim = lin_w_t.shape[1]
    args += [lin_w_t, lin_b]
    in_specs += [pl.BlockSpec(lin_w_t.shape, lambda b: (0, 0)),
                 pl.BlockSpec(lin_b.shape, lambda b: (0, 0))]

    kernel = functools.partial(tcn_fused_kernel, layers=tuple(layers),
                               ksize=ksize, L=L)
    out = pl.pallas_call(
        kernel,
        out_shape=jax.ShapeDtypeStruct((Bp, out_dim), jnp.float32),
        grid=(Bp // Bt,),
        in_specs=in_specs,
        out_specs=pl.BlockSpec((Bt, out_dim), lambda b: (b, 0)),
        compiler_params=pltpu.CompilerParams(
            dimension_semantics=("parallel",)),
    )(*args)
    return out[:B]


# ----------------------------------------------------------------------------
# Deterministic synthetic parameters (shapes as in the module __init__)
# ----------------------------------------------------------------------------
def init_params(key, input_size, output_size, num_channels, ksize):
    params = {"blocks": []}
    cin = input_size
    for cout in num_channels:
        key, k1, k2, k3, k4, k5, k6 = jax.random.split(key, 7)
        w1 = 0.1 * jax.random.normal(k1, (ksize, cin, cout), jnp.float32)
        b1 = 0.1 * jax.random.normal(k2, (1, cout), jnp.float32)
        w2 = 0.1 * jax.random.normal(k3, (ksize, cout, cout), jnp.float32)
        b2 = 0.1 * jax.random.normal(k4, (1, cout), jnp.float32)
        use_ds = (cin != cout)
        blk = dict(w1=w1, b1=b1, w2=w2, b2=b2, use_downsample=use_ds)
        if use_ds:
            blk["wd"] = 0.1 * jax.random.normal(k5, (cin, cout), jnp.float32)
            blk["bd"] = 0.1 * jax.random.normal(k6, (1, cout), jnp.float32)
        params["blocks"].append(blk)
        cin = cout
    key, kw, kb = jax.random.split(key, 3)
    # TCN.init_weights(): linear.weight ~ N(0, 0.01)
    lin_w = 0.01 * jax.random.normal(kw, (output_size, num_channels[-1]),
                                     jnp.float32)
    lin_b = 0.01 * jax.random.normal(kb, (1, output_size), jnp.float32)
    params["lin_w_t"] = jnp.transpose(lin_w)   # (C_last, output_size)
    params["lin_b"] = lin_b
    return params


# ----------------------------------------------------------------------------
# Pure-JAX reference (same math, no Pallas) for correctness check
# ----------------------------------------------------------------------------
def ref_forward(x_ncl, params, ksize):
    y = jnp.transpose(x_ncl, (0, 2, 1)).astype(jnp.float32)
    for i, blk in enumerate(params["blocks"]):
        d = 2 ** i

        def cconv(inp, w, b, d=d):
            L = inp.shape[1]
            out = jnp.zeros((inp.shape[0], L, w.shape[2]), jnp.float32)
            for j in range(ksize):
                s = (ksize - 1 - j) * d
                if s >= L:
                    continue
                shifted = jnp.pad(inp[:, :L - s, :], ((0, 0), (s, 0), (0, 0)))
                out = out + jnp.einsum('blc,cd->bld', shifted, w[j])
            return out + b[None]

        h = jax.nn.relu(cconv(y, blk["w1"], blk["b1"]))
        h = jax.nn.relu(cconv(h, blk["w2"], blk["b2"]))
        if blk["use_downsample"]:
            res = jnp.einsum('blc,cd->bld', y, blk["wd"]) + blk["bd"][None]
        else:
            res = y
        y = jax.nn.relu(h + res)
    return y[:, -1, :] @ params["lin_w_t"] + params["lin_b"]


# ----------------------------------------------------------------------------
if __name__ == "__main__":
    B, input_size, L = 2, 4, 16
    num_channels = [8, 8]        # layer 0 uses the 1x1 downsample, layer 1 not
    ksize = 3
    output_size = 5

    key = jax.random.PRNGKey(0)
    kx, kp = jax.random.split(key)
    x = jax.random.normal(kx, (B, input_size, L), jnp.float32)   # NCW input
    params = init_params(kp, input_size, output_size, num_channels, ksize)

    out = tcn_forward(x, params, ksize=ksize)
    out = jax.block_until_ready(out)
    assert out.shape == (B, output_size)

    ref = ref_forward(x, params, ksize)
    np.testing.assert_allclose(np.asarray(out), np.asarray(ref),
                               atol=5e-4, rtol=5e-3)
    print("KERNEL_OK")
</pallas_src>

<mosaic_0001>
module attributes {stable_mosaic.version = 11 : i64} {
  func.func @tcn_fused_kernel(%arg0: i32, %arg1: memref<32x4xf32, #tpu.memory_space<vmem>>, %arg2: memref<12x8xf32, #tpu.memory_space<vmem>>, %arg3: memref<1x8xf32, #tpu.memory_space<vmem>>, %arg4: memref<24x8xf32, #tpu.memory_space<vmem>>, %arg5: memref<1x8xf32, #tpu.memory_space<vmem>>, %arg6: memref<4x8xf32, #tpu.memory_space<vmem>>, %arg7: memref<1x8xf32, #tpu.memory_space<vmem>>, %arg8: memref<24x8xf32, #tpu.memory_space<vmem>>, %arg9: memref<1x8xf32, #tpu.memory_space<vmem>>, %arg10: memref<24x8xf32, #tpu.memory_space<vmem>>, %arg11: memref<1x8xf32, #tpu.memory_space<vmem>>, %arg12: memref<8x5xf32, #tpu.memory_space<vmem>>, %arg13: memref<1x5xf32, #tpu.memory_space<vmem>>, %arg14: memref<2x5xf32, #tpu.memory_space<vmem>>) attributes {dimension_semantics = [#tpu.dimension_semantics<parallel>], iteration_bounds = array<i64: 1>, scalar_prefetch = 0 : i64, scratch_operands = 0 : i64, tpu.core_type = #tpu.core_type<tc>, window_params = [{transform_indices = @transform_0, window_bounds = array<i64: 32, 4>}, {pipeline_mode = #tpu.pipeline_mode<synchronous>, transform_indices = @transform_1, window_bounds = array<i64: 12, 8>}, {pipeline_mode = #tpu.pipeline_mode<synchronous>, transform_indices = @transform_2, window_bounds = array<i64: 1, 8>}, {pipeline_mode = #tpu.pipeline_mode<synchronous>, transform_indices = @transform_3, window_bounds = array<i64: 24, 8>}, {pipeline_mode = #tpu.pipeline_mode<synchronous>, transform_indices = @transform_4, window_bounds = array<i64: 1, 8>}, {pipeline_mode = #tpu.pipeline_mode<synchronous>, transform_indices = @transform_5, window_bounds = array<i64: 4, 8>}, {pipeline_mode = #tpu.pipeline_mode<synchronous>, transform_indices = @transform_6, window_bounds = array<i64: 1, 8>}, {pipeline_mode = #tpu.pipeline_mode<synchronous>, transform_indices = @transform_7, window_bounds = array<i64: 24, 8>}, {pipeline_mode = #tpu.pipeline_mode<synchronous>, transform_indices = @transform_8, window_bounds = array<i64: 1, 8>}, {pipeline_mode = #tpu.pipeline_mode<synchronous>, transform_indices = @transform_9, window_bounds = array<i64: 24, 8>}, {pipeline_mode = #tpu.pipeline_mode<synchronous>, transform_indices = @transform_10, window_bounds = array<i64: 1, 8>}, {pipeline_mode = #tpu.pipeline_mode<synchronous>, transform_indices = @transform_11, window_bounds = array<i64: 8, 5>}, {pipeline_mode = #tpu.pipeline_mode<synchronous>, transform_indices = @transform_12, window_bounds = array<i64: 1, 5>}, {transform_indices = @transform_13, window_bounds = array<i64: 2, 5>}]} {
    %c0 = arith.constant 0 : index
    %c0_0 = arith.constant 0 : index
    %0 = vector.load %arg1[%c0, %c0_0] : memref<32x4xf32, #tpu.memory_space<vmem>>, vector<32x4xf32>
    %c0_1 = arith.constant 0 : index
    %c0_2 = arith.constant 0 : index
    %1 = vector.load %arg2[%c0_1, %c0_2] : memref<12x8xf32, #tpu.memory_space<vmem>>, vector<12x8xf32>
    %c0_3 = arith.constant 0 : index
    %c0_4 = arith.constant 0 : index
    %2 = vector.load %arg3[%c0_3, %c0_4] : memref<1x8xf32, #tpu.memory_space<vmem>>, vector<1x8xf32>
    %c0_5 = arith.constant 0 : index
    %c0_6 = arith.constant 0 : index
    %3 = vector.load %arg4[%c0_5, %c0_6] : memref<24x8xf32, #tpu.memory_space<vmem>>, vector<24x8xf32>
    %c0_7 = arith.constant 0 : index
    %c0_8 = arith.constant 0 : index
    %4 = vector.load %arg5[%c0_7, %c0_8] : memref<1x8xf32, #tpu.memory_space<vmem>>, vector<1x8xf32>
    %5 = tpu.iota {dimensions = array<i32: 0>} : vector<32x4xi32>
    %c16_i32 = arith.constant 16 : i32
    %c0_i32 = arith.constant 0 : i32
    %6 = arith.cmpi eq, %c16_i32, %c0_i32 : i32
    %c1_i32 = arith.constant 1 : i32
    %7 = arith.select %6, %c1_i32, %c16_i32 : i32
    %8 = vector.broadcast %7 : i32 to vector<32x4xi32>
    %9 = arith.remsi %5, %8 : vector<32x4xi32>
    %c0_i32_9 = arith.constant 0 : i32
    %10 = vector.broadcast %c0_i32_9 : i32 to vector<32x4xi32>
    %11 = arith.cmpi ne, %9, %10 : vector<32x4xi32>
    %c0_i32_10 = arith.constant 0 : i32
    %12 = vector.broadcast %c0_i32_10 : i32 to vector<32x4xi32>
    %13 = arith.cmpi slt, %9, %12 : vector<32x4xi32>
    %c0_i32_11 = arith.constant 0 : i32
    %14 = arith.cmpi slt, %7, %c0_i32_11 : i32
    %15 = vector.broadcast %14 : i1 to vector<32x4xi1>
    %16 = vector.broadcast %15 : vector<32x4xi1> to vector<32x4xi1>
    %17 = arith.xori %13, %16 : vector<32x4xi1>
    %18 = arith.andi %17, %11 : vector<32x4xi1>
    %19 = vector.broadcast %7 : i32 to vector<32x4xi32>
    %20 = arith.addi %9, %19 : vector<32x4xi32>
    %21 = arith.select %18, %20, %9 : vector<32x4xi1>, vector<32x4xi32>
    %c2_i32 = arith.constant 2 : i32
    %22 = tpu.dynamic_rotate %0 by %c2_i32 dim 0 : vector<32x4xf32>, i32 -> vector<32x4xf32>
    %c2_i32_12 = arith.constant 2 : i32
    %23 = vector.broadcast %c2_i32_12 : i32 to vector<32x4xi32>
    %24 = arith.cmpi sge, %21, %23 : vector<32x4xi32>
    %cst = arith.constant 0.000000e+00 : f32
    %25 = vector.broadcast %cst : f32 to vector<32x4xf32>
    %26 = arith.select %24, %22, %25 : vector<32x4xi1>, vector<32x4xf32>
    %c1_i32_13 = arith.constant 1 : i32
    %27 = tpu.dynamic_rotate %0 by %c1_i32_13 dim 0 : vector<32x4xf32>, i32 -> vector<32x4xf32>
    %c1_i32_14 = arith.constant 1 : i32
    %28 = vector.broadcast %c1_i32_14 : i32 to vector<32x4xi32>
    %29 = arith.cmpi sge, %21, %28 : vector<32x4xi32>
    %cst_15 = arith.constant 0.000000e+00 : f32
    %30 = vector.broadcast %cst_15 : f32 to vector<32x4xf32>
    %31 = arith.select %29, %27, %30 : vector<32x4xi1>, vector<32x4xf32>
    %32 = tpu.concatenate %26, %31, %0 in 1 : vector<32x4xf32>, vector<32x4xf32>, vector<32x4xf32> -> vector<32x12xf32>
    %cst_16 = arith.constant dense<0.000000e+00> : vector<32x8xf32>
    %33 = tpu.matmul %32, %1, %cst_16 {dimension_numbers = #tpu.dot_dimension_numbers<[1], [0], [0], [1], [0, 0, 1, 1], [], []>} : vector<32x12xf32>, vector<12x8xf32>, vector<32x8xf32> -> vector<32x8xf32>
    %34 = vector.broadcast %2 : vector<1x8xf32> to vector<32x8xf32>
    %35 = arith.addf %33, %34 : vector<32x8xf32>
    %cst_17 = arith.constant 0.000000e+00 : f32
    %36 = vector.broadcast %cst_17 : f32 to vector<32x8xf32>
    %37 = arith.maximumf %35, %36 : vector<32x8xf32>
    %38 = tpu.iota {dimensions = array<i32: 0>} : vector<32x8xi32>
    %c16_i32_18 = arith.constant 16 : i32
    %c0_i32_19 = arith.constant 0 : i32
    %39 = arith.cmpi eq, %c16_i32_18, %c0_i32_19 : i32
    %c1_i32_20 = arith.constant 1 : i32
    %40 = arith.select %39, %c1_i32_20, %c16_i32_18 : i32
    %41 = vector.broadcast %40 : i32 to vector<32x8xi32>
    %42 = arith.remsi %38, %41 : vector<32x8xi32>
    %c0_i32_21 = arith.constant 0 : i32
    %43 = vector.broadcast %c0_i32_21 : i32 to vector<32x8xi32>
    %44 = arith.cmpi ne, %42, %43 : vector<32x8xi32>
    %c0_i32_22 = arith.constant 0 : i32
    %45 = vector.broadcast %c0_i32_22 : i32 to vector<32x8xi32>
    %46 = arith.cmpi slt, %42, %45 : vector<32x8xi32>
    %c0_i32_23 = arith.constant 0 : i32
    %47 = arith.cmpi slt, %40, %c0_i32_23 : i32
    %48 = vector.broadcast %47 : i1 to vector<32x8xi1>
    %49 = vector.broadcast %48 : vector<32x8xi1> to vector<32x8xi1>
    %50 = arith.xori %46, %49 : vector<32x8xi1>
    %51 = arith.andi %50, %44 : vector<32x8xi1>
    %52 = vector.broadcast %40 : i32 to vector<32x8xi32>
    %53 = arith.addi %42, %52 : vector<32x8xi32>
    %54 = arith.select %51, %53, %42 : vector<32x8xi1>, vector<32x8xi32>
    %c2_i32_24 = arith.constant 2 : i32
    %55 = tpu.dynamic_rotate %37 by %c2_i32_24 dim 0 : vector<32x8xf32>, i32 -> vector<32x8xf32>
    %c2_i32_25 = arith.constant 2 : i32
    %56 = vector.broadcast %c2_i32_25 : i32 to vector<32x8xi32>
    %57 = arith.cmpi sge, %54, %56 : vector<32x8xi32>
    %cst_26 = arith.constant 0.000000e+00 : f32
    %58 = vector.broadcast %cst_26 : f32 to vector<32x8xf32>
    %59 = arith.select %57, %55, %58 : vector<32x8xi1>, vector<32x8xf32>
    %c1_i32_27 = arith.constant 1 : i32
    %60 = tpu.dynamic_rotate %37 by %c1_i32_27 dim 0 : vector<32x8xf32>, i32 -> vector<32x8xf32>
    %c1_i32_28 = arith.constant 1 : i32
    %61 = vector.broadcast %c1_i32_28 : i32 to vector<32x8xi32>
    %62 = arith.cmpi sge, %54, %61 : vector<32x8xi32>
    %cst_29 = arith.constant 0.000000e+00 : f32
    %63 = vector.broadcast %cst_29 : f32 to vector<32x8xf32>
    %64 = arith.select %62, %60, %63 : vector<32x8xi1>, vector<32x8xf32>
    %65 = tpu.concatenate %59, %64, %37 in 1 : vector<32x8xf32>, vector<32x8xf32>, vector<32x8xf32> -> vector<32x24xf32>
    %cst_30 = arith.constant dense<0.000000e+00> : vector<32x8xf32>
    %66 = tpu.matmul %65, %3, %cst_30 {dimension_numbers = #tpu.dot_dimension_numbers<[1], [0], [0], [1], [0, 0, 1, 1], [], []>} : vector<32x24xf32>, vector<24x8xf32>, vector<32x8xf32> -> vector<32x8xf32>
    %67 = vector.broadcast %4 : vector<1x8xf32> to vector<32x8xf32>
    %68 = arith.addf %66, %67 : vector<32x8xf32>
    %cst_31 = arith.constant 0.000000e+00 : f32
    %69 = vector.broadcast %cst_31 : f32 to vector<32x8xf32>
    %70 = arith.maximumf %68, %69 : vector<32x8xf32>
    %c0_32 = arith.constant 0 : index
    %c0_33 = arith.constant 0 : index
    %71 = vector.load %arg6[%c0_32, %c0_33] : memref<4x8xf32, #tpu.memory_space<vmem>>, vector<4x8xf32>
    %c0_34 = arith.constant 0 : index
    %c0_35 = arith.constant 0 : index
    %72 = vector.load %arg7[%c0_34, %c0_35] : memref<1x8xf32, #tpu.memory_space<vmem>>, vector<1x8xf32>
    %cst_36 = arith.constant dense<0.000000e+00> : vector<32x8xf32>
    %73 = tpu.matmul %0, %71, %cst_36 {dimension_numbers = #tpu.dot_dimension_numbers<[1], [0], [0], [1], [0, 0, 1, 1], [], []>} : vector<32x4xf32>, vector<4x8xf32>, vector<32x8xf32> -> vector<32x8xf32>
    %74 = vector.broadcast %72 : vector<1x8xf32> to vector<32x8xf32>
    %75 = arith.addf %73, %74 : vector<32x8xf32>
    %76 = arith.addf %70, %75 : vector<32x8xf32>
    %cst_37 = arith.constant 0.000000e+00 : f32
    %77 = vector.broadcast %cst_37 : f32 to vector<32x8xf32>
    %78 = arith.maximumf %76, %77 : vector<32x8xf32>
    %c0_38 = arith.constant 0 : index
    %c0_39 = arith.constant 0 : index
    %79 = vector.load %arg8[%c0_38, %c0_39] : memref<24x8xf32, #tpu.memory_space<vmem>>, vector<24x8xf32>
    %c0_40 = arith.constant 0 : index
    %c0_41 = arith.constant 0 : index
    %80 = vector.load %arg9[%c0_40, %c0_41] : memref<1x8xf32, #tpu.memory_space<vmem>>, vector<1x8xf32>
    %c0_42 = arith.constant 0 : index
    %c0_43 = arith.constant 0 : index
    %81 = vector.load %arg10[%c0_42, %c0_43] : memref<24x8xf32, #tpu.memory_space<vmem>>, vector<24x8xf32>
    %c0_44 = arith.constant 0 : index
    %c0_45 = arith.constant 0 : index
    %82 = vector.load %arg11[%c0_44, %c0_45] : memref<1x8xf32, #tpu.memory_space<vmem>>, vector<1x8xf32>
    %83 = tpu.iota {dimensions = array<i32: 0>} : vector<32x8xi32>
    %c16_i32_46 = arith.constant 16 : i32
    %c0_i32_47 = arith.constant 0 : i32
    %84 = arith.cmpi eq, %c16_i32_46, %c0_i32_47 : i32
    %c1_i32_48 = arith.constant 1 : i32
    %85 = arith.select %84, %c1_i32_48, %c16_i32_46 : i32
    %86 = vector.broadcast %85 : i32 to vector<32x8xi32>
    %87 = arith.remsi %83, %86 : vector<32x8xi32>
    %c0_i32_49 = arith.constant 0 : i32
    %88 = vector.broadcast %c0_i32_49 : i32 to vector<32x8xi32>
    %89 = arith.cmpi ne, %87, %88 : vector<32x8xi32>
    %c0_i32_50 = arith.constant 0 : i32
    %90 = vector.broadcast %c0_i32_50 : i32 to vector<32x8xi32>
    %91 = arith.cmpi slt, %87, %90 : vector<32x8xi32>
    %c0_i32_51 = arith.constant 0 : i32
    %92 = arith.cmpi slt, %85, %c0_i32_51 : i32
    %93 = vector.broadcast %92 : i1 to vector<32x8xi1>
    %94 = vector.broadcast %93 : vector<32x8xi1> to vector<32x8xi1>
    %95 = arith.xori %91, %94 : vector<32x8xi1>
    %96 = arith.andi %95, %89 : vector<32x8xi1>
    %97 = vector.broadcast %85 : i32 to vector<32x8xi32>
    %98 = arith.addi %87, %97 : vector<32x8xi32>
    %99 = arith.select %96, %98, %87 : vector<32x8xi1>, vector<32x8xi32>
    %c4_i32 = arith.constant 4 : i32
    %100 = tpu.dynamic_rotate %78 by %c4_i32 dim 0 : vector<32x8xf32>, i32 -> vector<32x8xf32>
    %c4_i32_52 = arith.constant 4 : i32
    %101 = vector.broadcast %c4_i32_52 : i32 to vector<32x8xi32>
    %102 = arith.cmpi sge, %99, %101 : vector<32x8xi32>
    %cst_53 = arith.constant 0.000000e+00 : f32
    %103 = vector.broadcast %cst_53 : f32 to vector<32x8xf32>
    %104 = arith.select %102, %100, %103 : vector<32x8xi1>, vector<32x8xf32>
    %c2_i32_54 = arith.constant 2 : i32
    %105 = tpu.dynamic_rotate %78 by %c2_i32_54 dim 0 : vector<32x8xf32>, i32 -> vector<32x8xf32>
    %c2_i32_55 = arith.constant 2 : i32
    %106 = vector.broadcast %c2_i32_55 : i32 to vector<32x8xi32>
    %107 = arith.cmpi sge, %99, %106 : vector<32x8xi32>
    %cst_56 = arith.constant 0.000000e+00 : f32
    %108 = vector.broadcast %cst_56 : f32 to vector<32x8xf32>
    %109 = arith.select %107, %105, %108 : vector<32x8xi1>, vector<32x8xf32>
    %110 = tpu.concatenate %104, %109, %78 in 1 : vector<32x8xf32>, vector<32x8xf32>, vector<32x8xf32> -> vector<32x24xf32>
    %cst_57 = arith.constant dense<0.000000e+00> : vector<32x8xf32>
    %111 = tpu.matmul %110, %79, %cst_57 {dimension_numbers = #tpu.dot_dimension_numbers<[1], [0], [0], [1], [0, 0, 1, 1], [], []>} : vector<32x24xf32>, vector<24x8xf32>, vector<32x8xf32> -> vector<32x8xf32>
    %112 = vector.broadcast %80 : vector<1x8xf32> to vector<32x8xf32>
    %113 = arith.addf %111, %112 : vector<32x8xf32>
    %cst_58 = arith.constant 0.000000e+00 : f32
    %114 = vector.broadcast %cst_58 : f32 to vector<32x8xf32>
    %115 = arith.maximumf %113, %114 : vector<32x8xf32>
    %116 = tpu.iota {dimensions = array<i32: 0>} : vector<32x8xi32>
    %c16_i32_59 = arith.constant 16 : i32
    %c0_i32_60 = arith.constant 0 : i32
    %117 = arith.cmpi eq, %c16_i32_59, %c0_i32_60 : i32
    %c1_i32_61 = arith.constant 1 : i32
    %118 = arith.select %117, %c1_i32_61, %c16_i32_59 : i32
    %119 = vector.broadcast %118 : i32 to vector<32x8xi32>
    %120 = arith.remsi %116, %119 : vector<32x8xi32>
    %c0_i32_62 = arith.constant 0 : i32
    %121 = vector.broadcast %c0_i32_62 : i32 to vector<32x8xi32>
    %122 = arith.cmpi ne, %120, %121 : vector<32x8xi32>
    %c0_i32_63 = arith.constant 0 : i32
    %123 = vector.broadcast %c0_i32_63 : i32 to vector<32x8xi32>
    %124 = arith.cmpi slt, %120, %123 : vector<32x8xi32>
    %c0_i32_64 = arith.constant 0 : i32
    %125 = arith.cmpi slt, %118, %c0_i32_64 : i32
    %126 = vector.broadcast %125 : i1 to vector<32x8xi1>
    %127 = vector.broadcast %126 : vector<32x8xi1> to vector<32x8xi1>
    %128 = arith.xori %124, %127 : vector<32x8xi1>
    %129 = arith.andi %128, %122 : vector<32x8xi1>
    %130 = vector.broadcast %118 : i32 to vector<32x8xi32>
    %131 = arith.addi %120, %130 : vector<32x8xi32>
    %132 = arith.select %129, %131, %120 : vector<32x8xi1>, vector<32x8xi32>
    %c4_i32_65 = arith.constant 4 : i32
    %133 = tpu.dynamic_rotate %115 by %c4_i32_65 dim 0 : vector<32x8xf32>, i32 -> vector<32x8xf32>
    %c4_i32_66 = arith.constant 4 : i32
    %134 = vector.broadcast %c4_i32_66 : i32 to vector<32x8xi32>
    %135 = arith.cmpi sge, %132, %134 : vector<32x8xi32>
    %cst_67 = arith.constant 0.000000e+00 : f32
    %136 = vector.broadcast %cst_67 : f32 to vector<32x8xf32>
    %137 = arith.select %135, %133, %136 : vector<32x8xi1>, vector<32x8xf32>
    %c2_i32_68 = arith.constant 2 : i32
    %138 = tpu.dynamic_rotate %115 by %c2_i32_68 dim 0 : vector<32x8xf32>, i32 -> vector<32x8xf32>
    %c2_i32_69 = arith.constant 2 : i32
    %139 = vector.broadcast %c2_i32_69 : i32 to vector<32x8xi32>
    %140 = arith.cmpi sge, %132, %139 : vector<32x8xi32>
    %cst_70 = arith.constant 0.000000e+00 : f32
    %141 = vector.broadcast %cst_70 : f32 to vector<32x8xf32>
    %142 = arith.select %140, %138, %141 : vector<32x8xi1>, vector<32x8xf32>
    %143 = tpu.concatenate %137, %142, %115 in 1 : vector<32x8xf32>, vector<32x8xf32>, vector<32x8xf32> -> vector<32x24xf32>
    %cst_71 = arith.constant dense<0.000000e+00> : vector<32x8xf32>
    %144 = tpu.matmul %143, %81, %cst_71 {dimension_numbers = #tpu.dot_dimension_numbers<[1], [0], [0], [1], [0, 0, 1, 1], [], []>} : vector<32x24xf32>, vector<24x8xf32>, vector<32x8xf32> -> vector<32x8xf32>
    %145 = vector.broadcast %82 : vector<1x8xf32> to vector<32x8xf32>
    %146 = arith.addf %144, %145 : vector<32x8xf32>
    %cst_72 = arith.constant 0.000000e+00 : f32
    %147 = vector.broadcast %cst_72 : f32 to vector<32x8xf32>
    %148 = arith.maximumf %146, %147 : vector<32x8xf32>
    %149 = arith.addf %148, %78 : vector<32x8xf32>
    %cst_73 = arith.constant 0.000000e+00 : f32
    %150 = vector.broadcast %cst_73 : f32 to vector<32x8xf32>
    %151 = arith.maximumf %149, %150 : vector<32x8xf32>
    %152 = tpu.iota {dimensions = array<i32: 0>} : vector<2x32xi32>
    %153 = tpu.iota {dimensions = array<i32: 1>} : vector<2x32xi32>
    %c16_i32_74 = arith.constant 16 : i32
    %154 = vector.broadcast %c16_i32_74 : i32 to vector<2x32xi32>
    %155 = arith.muli %152, %154 : vector<2x32xi32>
    %c15_i32 = arith.constant 15 : i32
    %156 = vector.broadcast %c15_i32 : i32 to vector<2x32xi32>
    %157 = arith.addi %155, %156 : vector<2x32xi32>
    %158 = arith.cmpi eq, %153, %157 : vector<2x32xi32>
    %159 = arith.extui %158 : vector<2x32xi1> to vector<2x32xi32>
    %160 = arith.sitofp %159 : vector<2x32xi32> to vector<2x32xf32>
    %cst_75 = arith.constant dense<0.000000e+00> : vector<2x8xf32>
    %161 = tpu.matmul %160, %151, %cst_75 {dimension_numbers = #tpu.dot_dimension_numbers<[1], [0], [0], [1], [0, 0, 1, 1], [], []>} : vector<2x32xf32>, vector<32x8xf32>, vector<2x8xf32> -> vector<2x8xf32>
    %c0_76 = arith.constant 0 : index
    %c0_77 = arith.constant 0 : index
    %162 = vector.load %arg12[%c0_76, %c0_77] : memref<8x5xf32, #tpu.memory_space<vmem>>, vector<8x5xf32>
    %cst_78 = arith.constant dense<0.000000e+00> : vector<2x5xf32>
    %163 = tpu.matmul %161, %162, %cst_78 {dimension_numbers = #tpu.dot_dimension_numbers<[1], [0], [0], [1], [0, 0, 1, 1], [], []>} : vector<2x8xf32>, vector<8x5xf32>, vector<2x5xf32> -> vector<2x5xf32>
    %c0_79 = arith.constant 0 : index
    %c0_80 = arith.constant 0 : index
    %164 = vector.load %arg13[%c0_79, %c0_80] : memref<1x5xf32, #tpu.memory_space<vmem>>, vector<1x5xf32>
    %165 = vector.broadcast %164 : vector<1x5xf32> to vector<2x5xf32>
    %166 = arith.addf %163, %165 : vector<2x5xf32>
    %c0_81 = arith.constant 0 : index
    %c0_82 = arith.constant 0 : index
    %167 = vector.load %arg14[%c0_81, %c0_82] : memref<2x5xf32, #tpu.memory_space<vmem>>, vector<2x5xf32>
    tpu.vector_store %arg14[%c0_81, %c0_82], %166 {strides = array<i32>} : memref<2x5xf32, #tpu.memory_space<vmem>>, vector<2x5xf32>,
    return
  }
  func.func @transform_0(%arg0: i32) -> (i32, i32) {
    %c0_i32 = arith.constant 0 : i32
    %c0_i32_0 = arith.constant 0 : i32
    return %arg0, %c0_i32 : i32, i32
  }
  func.func @transform_1(%arg0: i32) -> (i32, i32) {
    %c0_i32 = arith.constant 0 : i32
    %c0_i32_0 = arith.constant 0 : i32
    %c0_i32_1 = arith.constant 0 : i32
    return %c0_i32, %c0_i32_0 : i32, i32
  }
  func.func @transform_2(%arg0: i32) -> (i32, i32) {
    %c0_i32 = arith.constant 0 : i32
    %c0_i32_0 = arith.constant 0 : i32
    %c0_i32_1 = arith.constant 0 : i32
    return %c0_i32, %c0_i32_0 : i32, i32
  }
  func.func @transform_3(%arg0: i32) -> (i32, i32) {
    %c0_i32 = arith.constant 0 : i32
    %c0_i32_0 = arith.constant 0 : i32
    %c0_i32_1 = arith.constant 0 : i32
    return %c0_i32, %c0_i32_0 : i32, i32
  }
  func.func @transform_4(%arg0: i32) -> (i32, i32) {
    %c0_i32 = arith.constant 0 : i32
    %c0_i32_0 = arith.constant 0 : i32
    %c0_i32_1 = arith.constant 0 : i32
    return %c0_i32, %c0_i32_0 : i32, i32
  }
  func.func @transform_5(%arg0: i32) -> (i32, i32) {
    %c0_i32 = arith.constant 0 : i32
    %c0_i32_0 = arith.constant 0 : i32
    %c0_i32_1 = arith.constant 0 : i32
    return %c0_i32, %c0_i32_0 : i32, i32
  }
  func.func @transform_6(%arg0: i32) -> (i32, i32) {
    %c0_i32 = arith.constant 0 : i32
    %c0_i32_0 = arith.constant 0 : i32
    %c0_i32_1 = arith.constant 0 : i32
    return %c0_i32, %c0_i32_0 : i32, i32
  }
  func.func @transform_7(%arg0: i32) -> (i32, i32) {
    %c0_i32 = arith.constant 0 : i32
    %c0_i32_0 = arith.constant 0 : i32
    %c0_i32_1 = arith.constant 0 : i32
    return %c0_i32, %c0_i32_0 : i32, i32
  }
  func.func @transform_8(%arg0: i32) -> (i32, i32) {
    %c0_i32 = arith.constant 0 : i32
    %c0_i32_0 = arith.constant 0 : i32
    %c0_i32_1 = arith.constant 0 : i32
    return %c0_i32, %c0_i32_0 : i32, i32
  }
  func.func @transform_9(%arg0: i32) -> (i32, i32) {
    %c0_i32 = arith.constant 0 : i32
    %c0_i32_0 = arith.constant 0 : i32
    %c0_i32_1 = arith.constant 0 : i32
    return %c0_i32, %c0_i32_0 : i32, i32
  }
  func.func @transform_10(%arg0: i32) -> (i32, i32) {
    %c0_i32 = arith.constant 0 : i32
    %c0_i32_0 = arith.constant 0 : i32
    %c0_i32_1 = arith.constant 0 : i32
    return %c0_i32, %c0_i32_0 : i32, i32
  }
  func.func @transform_11(%arg0: i32) -> (i32, i32) {
    %c0_i32 = arith.constant 0 : i32
    %c0_i32_0 = arith.constant 0 : i32
    %c0_i32_1 = arith.constant 0 : i32
    return %c0_i32, %c0_i32_0 : i32, i32
  }
  func.func @transform_12(%arg0: i32) -> (i32, i32) {
    %c0_i32 = arith.constant 0 : i32
    %c0_i32_0 = arith.constant 0 : i32
    %c0_i32_1 = arith.constant 0 : i32
    return %c0_i32, %c0_i32_0 : i32, i32
  }
  func.func @transform_13(%arg0: i32) -> (i32, i32) {
    %c0_i32 = arith.constant 0 : i32
    %c0_i32_0 = arith.constant 0 : i32
    return %arg0, %c0_i32 : i32, i32
  }
}

</mosaic_0001>

<bundles_post_ra>
// kernel: tpu_custom_call.1
= control target key start
LH: loop header
LB: loop body
LE: loop exit
PB: predicated region body
PF: predicated region fallthrough
CT: control target
= control target key end

     0   :  { %v56_v2 = vlaneseq  ;;  %s1319_s14 = smov 8   ;;  %vm204_vm0 = vcmask 1043456   ;;  %s1728_s0 = inlined_call_operand.vmem [shape: f32[32,4], index: 0, kind: input, shape index: {}]   ;;  %s1729_s1 = inlined_call_operand.vmem [shape: f32[12,8], index: 1, kind: input, shape index: {}]   ;;  %s1730_s2 = inlined_call_operand.vmem [shape: f32[1,8], index: 2, kind: input, shape index: {}]   ;;  %s1731_s3 = inlined_call_operand.vmem [shape: f32[24,8], index: 3, kind: input, shape index: {}]   ;;  %s1732_s4 = inlined_call_operand.vmem [shape: f32[1,8], index: 4, kind: input, shape index: {}]   ;;  %s1733_s5 = inlined_call_operand.vmem [shape: f32[4,8], index: 5, kind: input, shape index: {}]   ;;  %s1734_s6 = inlined_call_operand.vmem [shape: f32[1,8], index: 6, kind: input, shape index: {}]   ;;  %s1735_s7 = inlined_call_operand.vmem [shape: f32[24,8], index: 7, kind: input, shape index: {}]   ;;  %s1736_s8 = inlined_call_operand.vmem [shape: f32[1,8], index: 8, kind: input, shape index: {}]   ;;  %s1737_s9 = inlined_call_operand.vmem [shape: f32[24,8], index: 9, kind: input, shape index: {}]   ;;  %s1738_s10 = inlined_call_operand.vmem [shape: f32[1,8], index: 10, kind: input, shape index: {}]   ;;  %s1739_s11 = inlined_call_operand.vmem [shape: f32[8,5], index: 11, kind: input, shape index: {}]   ;;  %s1740_s12 = inlined_call_operand.vmem [shape: f32[1,5], index: 12, kind: input, shape index: {}]   ;;  %s1741_s13 = inlined_call_operand.hbm [shape: f32[2,5], index: 13, kind: output, shape index: {}]  }
   0x1   :  { %v1400_v0 = vld [vmem:[%s1728_s0] sm:$0xff]  ;;  %v1405_v1 = vld [vmem:[%s1728_s0 + $0x8] sm:$0xff]  ;;  %v1410_v3 = vld [vmem:[%s1728_s0 + $0x18] sm:$0xff] }
   0x2   :  { %163 = vrot.lane.b32.xlu1 %v1400_v0, %s1319_s14  ;;  %v126_v4 = vrot.slane %v1400_v0, 7  ;;  %v127_v5 = vrot.slane %v1405_v1, 7  ;;  %v129_v6 = vrot.slane %v1410_v3, 7  ;;  %v1420_v7 = vld [vmem:[%s1728_s0 + $0x10] sm:$0xff]  ;;  %v49_v8 = vld [vmem:[%s1729_s1] sm:$0xff]  ;;  %v1426_v9 = vshrl.u32 %v56_v2, 7 }
   0x3   :  { %v128_v10 = vrot.slane %v1420_v7, 7  ;;  %v50_v11 = vld [vmem:[%s1729_s1 + $0x8] sm:$0xf] }
   0x4   :  { %v1263_v12 = vpack.c.bf16 %v50_v11, %v49_v8 }
   0x5   :  { %18 = vsyncpa [#allocation3], 0  ;;  %vm130_vm1 = vcmp.lt.s32.totalorder %v1426_v9, 1  ;;  %v1434_v13 = vand.u32 15, %v1426_v9  ;;  %v59_v14 = vadd.s32 16, %v1426_v9  ;;  %vm1320_vm2 = vmmov 1  }
   0x6   :  { %vm1264_vm3 = vmpackc.low %vm204_vm0, %vm1320_vm2  ;;  %v133_v15 = vsel %vm130_vm1, %v126_v4, %v127_v5  ;;  %165 = vrot.lane.b32.xlu1 %v1405_v1, %s1319_s14  ;;  %v134_v16 = vsel %vm130_vm1, %v129_v6, %v126_v4  ;;  %s1321_s0 = smov 4   ;;  %v131_v17 = vsel %vm130_vm1, %v128_v10, %v129_v6  ;;  %v132_v20 = vsel %vm130_vm1, %v127_v5, %v128_v10  ;;  %v52_v48 = vld [vmem:[%s1731_s3] sm:$0xff]  ;;  %v53_v49 = vld [vmem:[%s1731_s3 + $0x8] sm:$0xff]  ;;  %s1326_s27 = smov [#allocation2]  }
   0x7   :  { %149 = vrot.lane.b32.xlu0 %v133_v15, %s1321_s0  ;;  %vm135_vm4 = vcmp.ge.s32.totalorder %v1434_v13, 1  ;;  %v1447_v18 = vand.u32 15, %v59_v14  ;;  %1265 = vmatprep.subr.msk.bf16.mxu0 %vm1264_vm3, %v1263_v12  ;;  %v112_v23 = vrot.slane %v1410_v3, 6  ;;  %v109_v24 = vrot.slane %v1400_v0, 6  ;;  %v1123_v51 = vld [vmem:[%s1730_s2] ss:$0 sm:$0xff] }
   0x8   :  { %v139_v19 = vsel %vm135_vm4, %v134_v16, 0.0  ;;  %1268 = vmatpush3.bf16.msk.msra.mxu0 %vm1264_vm3, %v1263_v12  ;;  %v110_v25 = vrot.slane %v1405_v1, 6  ;;  %vm113_vm6 = vcmp.lt.s32.totalorder %v1426_v9, 2  ;;  %vm118_vm7 = vcmp.ge.s32.totalorder %v1434_v13, 2  ;;  %v470_v57 = vld [vmem:[%s1733_s5] sm:$0xf] }
   0x9   :  { %vm137_vm5 = vcmp.ge.s32.totalorder %v1447_v18, 1  ;;  %v117_v27 = vsel %vm113_vm6, %v112_v23, %v109_v24  ;;  %vm175_vm8 = vcmask 31744   ;;  %v111_v31 = vrot.slane %v1420_v7, 6  ;;  %v54_v58 = vld [vmem:[%s1731_s3 + $0x10] sm:$0xff]  ;;  %1215 = vmatprep.subr.msk.mxu0 %vm204_vm0, %v470_v57  ;;  %s1322_s2 = smov 16   ;;  %s1115_s28 = sshll.u32 %s1326_s27, 4  ;;  %s1116_s28 = int_to_ptr.vmem [resolvable:$true] %s1115_s28 }
   0xa   :  { %153 = vrot.lane.b32.xlu1 %v131_v17, %s1321_s0  ;;  %v141_v21 = vsel %vm137_vm5, %v132_v20, 0.0  ;;  %v116_v29 = vsel %vm113_vm6, %v109_v24, %v110_v25  ;;  %v122_v30 = vsel %vm118_vm7, %v117_v27, 0.0  ;;  %vm180_vm9 = vcmask 64512   ;;  %p1300_p1 = scmp.lt.s32.totalorder %s1116_s28, %s1116_s28 }
   0xb   :  { %147 = vrot.lane.b32.xlu0 %v139_v19, %s1321_s0  ;;  %vm191_vm10 = vcmask 97280   ;;  %v115_v37 = vsel %vm113_vm6, %v110_v25, %v111_v31  ;;  %vm120_vm11 = vcmp.ge.s32.totalorder %v1447_v18, 2  ;;  %v114_v39 = vsel %vm113_vm6, %v111_v31, %v112_v23 }
   0xc   :  { %v124_v41 = vsel %vm120_vm11, %v115_v37, 0.0  ;;  %v1269_v50 = vpack.c.bf16 %v53_v49, %v52_v48  ;;  %vm357_vm12 = vcmask 130048   ;;  %vm368_vm13 = vcmask 195584  }
   0xd   :  { %vm594_vm14 = vcmp.lt.s32.totalorder %v1426_v9, 4  ;;  %vm599_vm15 = vcmp.ge.s32.totalorder %v1434_v13, 4  ;;  %vm952_vm3 = vcmask 261120  }
   0xe   :  { %169 = vrot.lane.b32.xlu1 %v1410_v3, %s1319_s14  ;;  %1270 = vmatprep.subr.bf16.mxu1 %v1269_v50 }
   0xf   :  { %151 = vrot.lane.b32.xlu0 %v141_v21, %s1321_s0  ;;  %1272 = vmatpush3.bf16.msra.mxu1 %v1269_v50 }
  0x10   :  { %1207 = vmatprep.subr.mxu1 %v54_v58 }
  0x13   :  { %167 = vrot.lane.b32.xlu0 %v1420_v7, %s1319_s14  ;;  %1208 = vmatpush3.msra.mxu1 %v54_v58 }
  0x74   :  { %v164_v22 = vpop.permute.xlu1 %163 }
  0x78   :  { %v166_v26 = vpop.permute.xlu1 %165 }
  0x79   :  { %v150_v28 = vpop.permute.xlu0 %149 }
  0x7a   :  { %v177_v32 = vsel %vm175_vm8, %v116_v29, %v150_v28 }
  0x7b   :  { %v182_v38 = vsel %vm180_vm9, %v177_v32, %v166_v26 }
  0x7c   :  { %v154_v35 = vpop.permute.xlu1 %153 }
  0x7d   :  { %v148_v33 = vpop.permute.xlu0 %147  ;;  %v179_v42 = vsel %vm175_vm8, %v114_v39, %v154_v35 }
  0x7e   :  { %v176_v34 = vsel %vm175_vm8, %v122_v30, %v148_v33 }
  0x7f   :  { %v181_v36 = vsel %vm180_vm9, %v176_v34, %v164_v22 }
  0x80   :  { %1197 = vmatprep.mubr.msk.f32.mxu0 %vm191_vm10, %v181_v36  ;;  %v170_v43 = vpop.permute.xlu1 %169 }
  0x81   :  { %v152_v40 = vpop.permute.xlu0 %151  ;;  %1198 = vmatmul.mubr.msk.f32.vlgmr.msra.gmra.mrb[0].mxu0 %vm191_vm10, %v182_v38  ;;  %v184_v47 = vsel %vm180_vm9, %v179_v42, %v170_v43 }
  0x82   :  { %v178_v44 = vsel %vm175_vm8, %v124_v41, %v152_v40  ;;  %1216 = vmatpush3.msk.msra.mxu0 %vm204_vm0, %v470_v57  ;;  %vm601_vm0 = vcmp.ge.s32.totalorder %v1447_v18, 4  ;;  %v1145_v18 = vld [vmem:[%s1738_s10] ss:$0 sm:$0xff] }
  0x85   :  { %v168_v45 = vpop.permute.xlu0 %167 }
  0x86   :  { %v183_v46 = vsel %vm180_vm9, %v178_v44, %v168_v45 }
  0x87   :  { %1200 = vmatprep.mubr.msk.f32.mxu0 %vm191_vm10, %v183_v46  ;;  %v1129_v46 = vld [vmem:[%s1732_s4] ss:$0 sm:$0xff] }
  0x88   :  { %1201 = vmatmul.mubr.msk.f32.gmra.mrb[2].mxu0 %vm191_vm10, %v184_v47  ;;  %v1134_v47 = vld [vmem:[%s1734_s6] ss:$0 sm:$0xff] }
  0x89   :  { %1217 = vmatprep.mubr.msk.f32.mxu0 %vm175_vm8, %v1400_v0 }
  0x8c   :  { %1218 = vmatmul.mubr.msk.f32.vlgmr.msra.gmra.mrb[4].mxu0 %vm175_vm8, %v1405_v1 }
  0x8d   :  { %1220 = vmatprep.mubr.msk.f32.mxu0 %vm175_vm8, %v1420_v7 }
  0x90   :  { %1221 = vmatmul.mubr.msk.f32.gmra.mrb[6].mxu0 %vm175_vm8, %v1410_v3 }
 0x154   :  { %v1199_v52 = vpop.f32.mrb[0].mxu0 }
 0x155   :  { %v280_v53 = vadd.f32 %v1199_v52, %v1123_v51  ;;  %v274_v54 = vpop.f32.mrb[1].mxu0  ;;  %v582_v52 = vld [vmem:[%s1735_s7] sm:$0xff] }
 0x156   :  { %v275_v55 = vadd.f32 %v1123_v51, %v274_v54 }
 0x157   :  { %v294_v56 = vmax.f32 %v280_v53, 0.0  ;;  %v583_v53 = vld [vmem:[%s1735_s7 + $0x8] sm:$0xff] }
 0x158   :  { %v293_v59 = vmax.f32 %v275_v55, 0.0 }
 0x159   :  { %v298_v60 = vrot.slane %v294_v56, 6  ;;  %v310_v61 = vrot.slane %v294_v56, 7  ;;  %343 = vrot.lane.b32.xlu1 %v294_v56, %s1322_s2  ;;  %v1273_v56 = vpack.c.bf16 %v583_v53, %v582_v52  ;;  %v586_v52 = vld [vmem:[%s1737_s9] sm:$0xff]  ;;  %v587_v53 = vld [vmem:[%s1737_s9 + $0x8] sm:$0xff] }
 0x15a   :  { %v297_v62 = vrot.slane %v293_v59, 6  ;;  %v309_v63 = vrot.slane %v293_v59, 7  ;;  %341 = vrot.lane.b32.xlu0 %v293_v59, %s1322_s2 }
 0x15b   :  { %v1202_v0 = vpop.f32.mrb[2].mxu0  ;;  %1274 = vmatprep.subr.bf16.mxu1 %v1273_v56 }
 0x15c   :  { %v290_v4 = vadd.f32 %v1202_v0, %v1123_v51  ;;  %v284_v5 = vpop.f32.mrb[3].mxu0  ;;  %v315_v6 = vsel %vm130_vm1, %v309_v63, %v310_v61  ;;  %v303_v8 = vsel %vm113_vm6, %v297_v62, %v298_v60 }
 0x15d   :  { %v285_v10 = vadd.f32 %v1123_v51, %v284_v5  ;;  %327 = vrot.lane.b32.xlu1 %v315_v6, %s1319_s14 }
 0x15e   :  { %v296_v11 = vmax.f32 %v290_v4, 0.0 }
 0x15f   :  { %v295_v12 = vmax.f32 %v285_v10, 0.0  ;;  %v1219_v42 = vpop.f32.mrb[4].mxu0 }
 0x160   :  { %v300_v1 = vrot.slane %v296_v11, 6  ;;  %v312_v14 = vrot.slane %v296_v11, 7  ;;  %v555_v43 = vpop.f32.mrb[5].mxu0  ;;  %v561_v51 = vadd.f32 %v1219_v42, %v1134_v47 }
 0x161   :  { %v299_v15 = vrot.slane %v295_v12, 6  ;;  %v311_v16 = vrot.slane %v295_v12, 7  ;;  %v556_v55 = vadd.f32 %v1134_v47, %v555_v43 }
 0x162   :  { %v316_v17 = vsel %vm130_vm1, %v312_v14, %v309_v63  ;;  %v304_v19 = vsel %vm113_vm6, %v300_v1, %v297_v62  ;;  %v584_v63 = vld [vmem:[%s1735_s7 + $0x10] sm:$0xff] }
 0x163   :  { %v317_v7 = vsel %vm135_vm4, %v316_v17, 0.0  ;;  %v313_v20 = vsel %vm130_vm1, %v311_v16, %v312_v14  ;;  %v314_v21 = vsel %vm130_vm1, %v310_v61, %v311_v16  ;;  %v301_v3 = vsel %vm113_vm6, %v299_v15, %v300_v1  ;;  %v1222_v44 = vpop.f32.mrb[6].mxu0 }
 0x164   :  { %325 = vrot.lane.b32.xlu0 %v317_v7, %s1319_s14  ;;  %331 = vrot.lane.b32.xlu1 %v313_v20, %s1319_s14  ;;  %v302_v22 = vsel %vm113_vm6, %v298_v60, %v299_v15  ;;  %v319_v23 = vsel %vm137_vm5, %v314_v21, 0.0  ;;  %v305_v29 = vsel %vm118_vm7, %v304_v19, 0.0  ;;  %v565_v45 = vpop.f32.mrb[7].mxu0  ;;  %v571_v6 = vadd.f32 %v1222_v44, %v1134_v47 }
 0x165   :  { %v307_v35 = vsel %vm120_vm11, %v302_v22, 0.0  ;;  %v566_v10 = vadd.f32 %v1134_v47, %v565_v45  ;;  %vm1324_vm1 = vmmov 0   ;;  %vm1107_vm4 = vcmask 33792  }
 0x168   :  { %329 = vrot.lane.b32.xlu0 %v319_v23, %s1319_s14  ;;  %347 = vrot.lane.b32.xlu1 %v296_v11, %s1322_s2 }
 0x16c   :  { %345 = vrot.lane.b32.xlu0 %v295_v12, %s1322_s2 }
 0x1cb   :  { %v344_v24 = vpop.permute.xlu1 %343 }
 0x1cc   :  { %v342_v25 = vpop.permute.xlu0 %341 }
 0x1cf   :  { %v328_v26 = vpop.permute.xlu1 %327 }
 0x1d0   :  { %v354_v27 = vsel %vm180_vm9, %v303_v8, %v328_v26 }
 0x1d1   :  { %v359_v33 = vsel %vm357_vm12, %v354_v27, %v344_v24 }
 0x1d6   :  { %v326_v28 = vpop.permute.xlu0 %325  ;;  %v332_v31 = vpop.permute.xlu1 %331 }
 0x1d7   :  { %v353_v30 = vsel %vm180_vm9, %v305_v29, %v326_v28  ;;  %v356_v39 = vsel %vm180_vm9, %v301_v3, %v332_v31 }
 0x1d8   :  { %v358_v32 = vsel %vm357_vm12, %v353_v30, %v342_v25 }
 0x1d9   :  { %1209 = vmatprep.mubr.msk.f32.mxu1 %vm368_vm13, %v358_v32 }
 0x1da   :  { %v330_v34 = vpop.permute.xlu0 %329  ;;  %1210 = vmatmul.mubr.msk.f32.vlgmr.msra.gmra.mrb[0].mxu1 %vm368_vm13, %v359_v33  ;;  %v348_v36 = vpop.permute.xlu1 %347 }
 0x1db   :  { %v355_v37 = vsel %vm180_vm9, %v307_v35, %v330_v34  ;;  %v361_v41 = vsel %vm357_vm12, %v356_v39, %v348_v36  ;;  %1276 = vmatpush3.bf16.msra.mxu1 %v1273_v56 }
 0x1dc   :  { %1227 = vmatprep.subr.mxu1 %v584_v63 }
 0x1de   :  { %v346_v38 = vpop.permute.xlu0 %345 }
 0x1df   :  { %v360_v40 = vsel %vm357_vm12, %v355_v37, %v346_v38  ;;  %1228 = vmatpush3.msra.mxu1 %v584_v63 }
 0x1e0   :  { %1212 = vmatprep.mubr.msk.f32.mxu1 %vm368_vm13, %v360_v40 }
 0x1e1   :  { %1213 = vmatmul.mubr.msk.f32.gmra.mrb[2].mxu1 %vm368_vm13, %v361_v41 }
 0x2ad   :  { %v1211_v48 = vpop.f32.mrb[0].mxu1 }
 0x2ae   :  { %v453_v49 = vadd.f32 %v1211_v48, %v1129_v46  ;;  %v447_v50 = vpop.f32.mrb[1].mxu1 }
 0x2af   :  { %v448_v54 = vadd.f32 %v1129_v46, %v447_v50 }
 0x2b0   :  { %v467_v57 = vmax.f32 %v453_v49, 0.0 }
 0x2b1   :  { %v466_v58 = vmax.f32 %v448_v54, 0.0  ;;  %v1140_v54 = vld [vmem:[%s1736_s8] ss:$0 sm:$0xff] }
 0x2b2   :  { %v575_v59 = vadd.f32 %v561_v51, %v467_v57 }
 0x2b3   :  { %v574_v60 = vadd.f32 %v556_v55, %v466_v58  ;;  %v1277_v55 = vpack.c.bf16 %v587_v53, %v586_v52 }
 0x2b4   :  { %v1572_v61 = vmax.f32 %v575_v59, 0.0  ;;  %v1214_v62 = vpop.f32.mrb[2].mxu1 }
 0x2b5   :  { %v1577_v0 = vmax.f32 %v574_v60, 0.0  ;;  %v463_v4 = vadd.f32 %v1214_v62, %v1129_v46  ;;  %v457_v5 = vpop.f32.mrb[3].mxu1  ;;  %1278 = vmatprep.subr.bf16.mxu0 %v1277_v55  ;;  %v588_v62 = vld [vmem:[%s1737_s9 + $0x10] sm:$0xff] }
 0x2b6   :  { %v458_v8 = vadd.f32 %v1129_v46, %v457_v5  ;;  %641 = vrot.lane.b32.xlu1 %v1572_v61, %s1322_s2  ;;  %v608_v11 = vrot.slane %v1572_v61, 6  ;;  %v591_v28 = vrot.slane %v1572_v61, 4  ;;  %1280 = vmatpush3.bf16.msra.mxu0 %v1277_v55 }
 0x2b7   :  { %v469_v12 = vmax.f32 %v463_v4, 0.0  ;;  %639 = vrot.lane.b32.xlu0 %v1577_v0, %s1322_s2  ;;  %v607_v1 = vrot.slane %v1577_v0, 6  ;;  %v590_v29 = vrot.slane %v1577_v0, 4  ;;  %1239 = vmatprep.subr.mxu0 %v588_v62 }
 0x2b8   :  { %v468_v14 = vmax.f32 %v458_v8, 0.0 }
 0x2b9   :  { %v577_v15 = vadd.f32 %v571_v6, %v469_v12  ;;  %v613_v16 = vsel %vm113_vm6, %v607_v1, %v608_v11  ;;  %v597_v33 = vsel %vm594_vm14, %v590_v29, %v591_v28 }
 0x2ba   :  { %v576_v17 = vadd.f32 %v566_v10, %v468_v14  ;;  %625 = vrot.lane.b32.xlu1 %v613_v16, %s1319_s14  ;;  %1240 = vmatpush3.msra.mxu0 %v588_v62 }
 0x2bb   :  { %v1588_v19 = vmax.f32 %v577_v15, 0.0 }
 0x2bc   :  { %v1590_v7 = vmax.f32 %v576_v17, 0.0 }
 0x2bd   :  { %v610_v20 = vrot.slane %v1588_v19, 6  ;;  %v593_v27 = vrot.slane %v1588_v19, 4 }
 0x2be   :  { %v609_v21 = vrot.slane %v1590_v7, 6  ;;  %v592_v37 = vrot.slane %v1590_v7, 4 }
 0x2bf   :  { %v614_v3 = vsel %vm113_vm6, %v610_v20, %v607_v1  ;;  %v598_v32 = vsel %vm594_vm14, %v593_v27, %v590_v29 }
 0x2c0   :  { %v615_v22 = vsel %vm118_vm7, %v614_v3, 0.0  ;;  %v611_v23 = vsel %vm113_vm6, %v609_v21, %v610_v20  ;;  %v612_v24 = vsel %vm113_vm6, %v608_v11, %v609_v21  ;;  %v603_v36 = vsel %vm599_vm15, %v598_v32, 0.0 }
 0x2c1   :  { %623 = vrot.lane.b32.xlu0 %v615_v22, %s1319_s14  ;;  %629 = vrot.lane.b32.xlu1 %v611_v23, %s1319_s14  ;;  %v617_v25 = vsel %vm120_vm11, %v612_v24, 0.0  ;;  %v596_v42 = vsel %vm594_vm14, %v591_v28, %v592_v37  ;;  %v595_v46 = vsel %vm594_vm14, %v592_v37, %v593_v27 }
 0x2c2   :  { %v605_v44 = vsel %vm601_vm0, %v596_v42, 0.0 }
 0x2c5   :  { %627 = vrot.lane.b32.xlu0 %v617_v25, %s1319_s14  ;;  %645 = vrot.lane.b32.xlu1 %v1588_v19, %s1322_s2 }
 0x2c9   :  { %643 = vrot.lane.b32.xlu0 %v1590_v7, %s1322_s2 }
 0x328   :  { %v642_v26 = vpop.permute.xlu1 %641 }
 0x329   :  { %v640_v30 = vpop.permute.xlu0 %639 }
 0x32c   :  { %v626_v31 = vpop.permute.xlu1 %625 }
 0x32d   :  { %v652_v34 = vsel %vm180_vm9, %v597_v33, %v626_v31 }
 0x32e   :  { %v656_v41 = vsel %vm357_vm12, %v652_v34, %v642_v26 }
 0x333   :  { %v624_v35 = vpop.permute.xlu0 %623  ;;  %v630_v39 = vpop.permute.xlu1 %629 }
 0x334   :  { %v651_v38 = vsel %vm180_vm9, %v603_v36, %v624_v35  ;;  %v654_v49 = vsel %vm180_vm9, %v595_v46, %v630_v39 }
 0x335   :  { %v655_v40 = vsel %vm357_vm12, %v651_v38, %v640_v30 }
 0x336   :  { %1229 = vmatprep.mubr.msk.f32.mxu1 %vm368_vm13, %v655_v40 }
 0x337   :  { %v628_v43 = vpop.permute.xlu0 %627  ;;  %1230 = vmatmul.mubr.msk.f32.vlgmr.msra.gmra.mrb[4].mxu1 %vm368_vm13, %v656_v41  ;;  %v646_v45 = vpop.permute.xlu1 %645 }
 0x338   :  { %v653_v47 = vsel %vm180_vm9, %v605_v44, %v628_v43  ;;  %v658_v51 = vsel %vm357_vm12, %v654_v49, %v646_v45  ;;  %v1325_v49 = vmov 0.0  }
 0x33b   :  { %v644_v48 = vpop.permute.xlu0 %643 }
 0x33c   :  { %v657_v50 = vsel %vm357_vm12, %v653_v47, %v644_v48  ;;  %v1323_v48 = vmov 0.0|0.0  }
 0x33d   :  { %1232 = vmatprep.mubr.msk.f32.mxu1 %vm368_vm13, %v657_v50  ;;  %1281 = vmatprep.subr.bf16.mxu1 %v1323_v48 }
 0x33e   :  { %1233 = vmatmul.mubr.msk.f32.gmra.mrb[6].mxu1 %vm368_vm13, %v658_v51 }
 0x33f   :  { %1255 = vmatprep.mubr.msk.f32.mxu1 %vm1324_vm1, %v1325_v49 }
 0x40a   :  { %v1231_v56 = vpop.f32.mrb[4].mxu1 }
 0x40b   :  { %v749_v57 = vadd.f32 %v1231_v56, %v1140_v54  ;;  %v743_v58 = vpop.f32.mrb[5].mxu1 }
 0x40c   :  { %v744_v59 = vadd.f32 %v1140_v54, %v743_v58 }
 0x40d   :  { %v763_v60 = vmax.f32 %v749_v57, 0.0 }
 0x40e   :  { %v762_v63 = vmax.f32 %v744_v59, 0.0 }
 0x40f   :  { %v767_v4 = vrot.slane %v763_v60, 4  ;;  %v779_v5 = vrot.slane %v763_v60, 6  ;;  %812 = vrot.lane.b32.xlu1 %v763_v60, %s1322_s2 }
 0x410   :  { %v766_v6 = vrot.slane %v762_v63, 4  ;;  %v778_v8 = vrot.slane %v762_v63, 6  ;;  %810 = vrot.lane.b32.xlu0 %v762_v63, %s1322_s2 }
 0x411   :  { %v1234_v10 = vpop.f32.mrb[6].mxu1 }
 0x412   :  { %v759_v11 = vadd.f32 %v1234_v10, %v1140_v54  ;;  %v753_v12 = vpop.f32.mrb[7].mxu1  ;;  %v784_v1 = vsel %vm113_vm6, %v778_v8, %v779_v5  ;;  %v772_v14 = vsel %vm594_vm14, %v766_v6, %v767_v4 }
 0x413   :  { %v754_v15 = vadd.f32 %v1140_v54, %v753_v12  ;;  %796 = vrot.lane.b32.xlu1 %v784_v1, %s1319_s14  ;;  %v946_v12 = vand.u32 127, %v56_v2 }
 0x414   :  { %v765_v16 = vmax.f32 %v759_v11, 0.0 }
 0x415   :  { %v764_v17 = vmax.f32 %v754_v15, 0.0 }
 0x416   :  { %v769_v20 = vrot.slane %v765_v16, 4  ;;  %v781_v21 = vrot.slane %v765_v16, 6 }
 0x417   :  { %v768_v3 = vrot.slane %v764_v17, 4  ;;  %v780_v22 = vrot.slane %v764_v17, 6 }
 0x418   :  { %v785_v23 = vsel %vm113_vm6, %v781_v21, %v778_v8  ;;  %v773_v24 = vsel %vm594_vm14, %v769_v20, %v766_v6 }
 0x419   :  { %v786_v25 = vsel %vm118_vm7, %v785_v23, 0.0  ;;  %v782_v26 = vsel %vm113_vm6, %v780_v22, %v781_v21  ;;  %v783_v27 = vsel %vm113_vm6, %v779_v5, %v780_v22  ;;  %v770_v28 = vsel %vm594_vm14, %v768_v3, %v769_v20 }
 0x41a   :  { %794 = vrot.lane.b32.xlu0 %v786_v25, %s1319_s14  ;;  %800 = vrot.lane.b32.xlu1 %v782_v26, %s1319_s14  ;;  %v771_v29 = vsel %vm594_vm14, %v767_v4, %v768_v3  ;;  %v788_v30 = vsel %vm120_vm11, %v783_v27, 0.0  ;;  %v774_v36 = vsel %vm599_vm15, %v773_v24, 0.0  ;;  %v947_v4 = vmul.u32 16, %v1426_v9  ;;  %v1026_v9 = vld [vmem:[%s1739_s11] sm:$0xff]  ;;  %s1295_s11 = scalar_lea.vmem %s1116_s28, 32 }
 0x41b   :  { %v776_v42 = vsel %vm601_vm0, %v771_v29, 0.0  ;;  %p1296_p0 = scmp.ne.s32.totalorder %s1116_s28, %s1295_s11  ;;  %p1301_p2 = scmp.lt.s32.totalorder %s1295_s11, %s1295_s11 }
 0x41c   :  { %v948_v1 = vadd.s32 15, %v947_v4 }
 0x41d   :  { %p1302_p3 = por %p1301_p2, %p1300_p1 }
 0x41e   :  { %798 = vrot.lane.b32.xlu0 %v788_v30, %s1319_s14  ;;  %816 = vrot.lane.b32.xlu1 %v765_v16, %s1322_s2  ;;  %vm949_vm2 = vcmp.eq.s32.totalorder %v946_v12, %v948_v1 }
 0x41f   :  { %v1150_v16 = vsel %vm949_vm2, 1.0, %v1325_v49  ;;  %p1303_p4 = pnand %p1302_p3, %p1296_p0 }
 0x422   :  { %814 = vrot.lane.b32.xlu0 %v764_v17, %s1322_s2 }
 0x481   :  { %v813_v31 = vpop.permute.xlu1 %812 }
 0x482   :  { %v811_v32 = vpop.permute.xlu0 %810 }
 0x485   :  { %v797_v33 = vpop.permute.xlu1 %796 }
 0x486   :  { %v823_v34 = vsel %vm180_vm9, %v772_v14, %v797_v33 }
 0x487   :  { %v827_v40 = vsel %vm357_vm12, %v823_v34, %v813_v31 }
 0x48c   :  { %v795_v35 = vpop.permute.xlu0 %794  ;;  %v801_v38 = vpop.permute.xlu1 %800 }
 0x48d   :  { %v822_v37 = vsel %vm180_vm9, %v774_v36, %v795_v35  ;;  %v825_v45 = vsel %vm180_vm9, %v770_v28, %v801_v38 }
 0x48e   :  { %v826_v39 = vsel %vm357_vm12, %v822_v37, %v811_v32 }
 0x48f   :  { %1241 = vmatprep.mubr.msk.f32.mxu0 %vm368_vm13, %v826_v39 }
 0x490   :  { %v799_v41 = vpop.permute.xlu0 %798  ;;  %1242 = vmatmul.mubr.msk.f32.vlgmr.msra.gmra.mrb[8].mxu0 %vm368_vm13, %v827_v40  ;;  %v817_v43 = vpop.permute.xlu1 %816 }
 0x491   :  { %v824_v44 = vsel %vm180_vm9, %v776_v42, %v799_v41  ;;  %v829_v47 = vsel %vm357_vm12, %v825_v45, %v817_v43 }
 0x494   :  { %v815_v13 = vpop.permute.xlu0 %814 }
 0x495   :  { %v828_v46 = vsel %vm357_vm12, %v824_v44, %v815_v13 }
 0x496   :  { %1244 = vmatprep.mubr.msk.f32.mxu0 %vm368_vm13, %v828_v46 }
 0x497   :  { %1245 = vmatmul.mubr.msk.f32.gmra.mrb[10].mxu0 %vm368_vm13, %v829_v47 }
 0x563   :  { %v1243_v50 = vpop.f32.mrb[8].mxu0 }
 0x564   :  { %v920_v51 = vadd.f32 %v1243_v50, %v1145_v18  ;;  %v914_v52 = vpop.f32.mrb[9].mxu0 }
 0x565   :  { %v915_v53 = vadd.f32 %v1145_v18, %v914_v52 }
 0x566   :  { %v934_v54 = vmax.f32 %v920_v51, 0.0 }
 0x567   :  { %v933_v55 = vmax.f32 %v915_v53, 0.0 }
 0x568   :  { %v938_v56 = vadd.f32 %v934_v54, %v1572_v61 }
 0x569   :  { %v937_v57 = vadd.f32 %v933_v55, %v1577_v0 }
 0x56a   :  { %v942_v58 = vmax.f32 %v938_v56, 0.0  ;;  %v1246_v59 = vpop.f32.mrb[10].mxu0 }
 0x56b   :  { %v941_v60 = vmax.f32 %v937_v57, 0.0  ;;  %v930_v62 = vadd.f32 %v1246_v59, %v1145_v18  ;;  %v924_v63 = vpop.f32.mrb[11].mxu0 }
 0x56c   :  { %v925_v5 = vadd.f32 %v1145_v18, %v924_v63 }
 0x56d   :  { %v1282_v6 = vpack.c.bf16 %v942_v58, %v941_v60  ;;  %v936_v8 = vmax.f32 %v930_v62, 0.0 }
 0x56e   :  { %v935_v10 = vmax.f32 %v925_v5, 0.0 }
 0x56f   :  { %v940_v11 = vadd.f32 %v936_v8, %v1588_v19  ;;  %1283 = vmatpush3.bf16.msra.mxu1 %v1282_v6 }
 0x570   :  { %v939_v61 = vadd.f32 %v935_v10, %v1590_v7  ;;  %1284 = vmatprep.subr.bf16.mxu1 %v1323_v48  ;;  %v1152_v7 = vld [vmem:[%s1740_s12] ss:$0 sm:$0xff] }
 0x571   :  { %v944_v0 = vmax.f32 %v940_v11, 0.0 }
 0x572   :  { %v943_v14 = vmax.f32 %v939_v61, 0.0 }
 0x574   :  { %v1285_v15 = vpack.c.bf16 %v944_v0, %v943_v14 }
 0x576   :  { %1286 = vmatpush3.bf16.msra.mxu1 %v1285_v15 }
 0x577   :  { %1258 = vmatprep.subr.mxu1 %v1325_v49 }
 0x579   :  { %1256 = vmatmul.mubr.msk.f32.vlgmr.msra.gmra.mrb[8].mxu1 %vm952_vm3, %v1150_v16 }
 0x57a   :  { %1259 = vmatpush3.msra.mxu1 %v1026_v9  ;;  %1260 = vmatprep.mubr.msk.f32.mxu1 %vm1324_vm1, %v1325_v49 }
 0x64c   :  { %v1022_v2 = vpop.f32.mrb[8].mxu1 }
 0x64d   :  { %v1257_v19 = vpop.f32.mrb[9].mxu1  ;;  %1261 = vmatmul.mubr.msk.f32.vlgmr.msra.gmra.mrb[10].mxu1 %vm180_vm9, %v1022_v2 }
 0x720   :  { %v1103_v17 = vpop.f32.mrb[10].mxu1 }
 0x721   :  { %v1104_v20 = vadd.f32 %v1152_v7, %v1103_v17  ;;  %v1262_v21 = vpop.f32.mrb[11].mxu1 }
 0x723   :  { %1108 = vst.msk [vmem:[#allocation2] sm:$0x3] %vm1107_vm4, %v1104_v20 }
 0x724   :  { %1306 = shalt.err (!%p1303_p4)
}
 0x725   :  { %s1307_s3 = scalar_lea.hbm %s1741_s13, 32 }
 0x726   :  { %p1308_p5 = scmp.ne.s32.totalorder %s1741_s13, %s1307_s3  ;;  %p1311_p6 = scmp.lt.u32.totalorder %s1307_s3, %s1741_s13 }
 0x728   :  { %p1313_p7 = pnand %p1311_p6, %p1308_p5 }
 0x72a   :  { %1316 = shalt.err (!%p1313_p7)
}
 0x72b   :  { %1118 = dma.vmem_to_hbm [thread:$0]  %s1116_s28, 32, %s1741_s13, [#allocation3]  }
 0x72c   :  { %1317 = dma.done.wait [#allocation3], 32  }
 0x72d   :  { %1318 = vsyncadd [#allocation3], 4294967264 }
 0x72e   :  { %1122 = vsyncpa [#allocation3], 1 }

</bundles_post_ra>
